<compile_context>
chip_gen: v6e
topology: v6e:2x2x1
jax: 0.10.0
libtpu: 0.0.40
codegen_flags: <defaults>
</compile_context>

<pallas_src>
import functools

import jax
import jax.numpy as jnp
from jax.experimental import pallas as pl
from jax.experimental.pallas import tpu as pltpu

BOLTZMANN_CONST = 1.380649e-23
ELEMENTARY_CHARGE = 1.60217663e-19

_LANES = 128            # lane-dense last dim (full vreg width, unmasked stores)
_MAX_BLOCK_ROWS = 2048  # 2048 * 128 * 4 B = 1 MiB per block (double-buffered)


def _apply_pd(x, n_th, n_sh, responsivity, dark_current, c_thermal, c_shot):
    """Shared elementwise PD math (f32)."""
    y = x * jnp.float32(responsivity) + jnp.float32(dark_current)
    y = y + n_th * jnp.float32(c_thermal)          # thermal noise (additive)
    y = y * (1.0 + n_sh * jnp.float32(c_shot))     # shot noise (multiplicative)
    return y


def _std_normal(shape):
    """Standard-normal field from the in-kernel TPU PRNG (prng_seed first)."""
    if hasattr(pltpu, "stateful_normal"):
        return pltpu.stateful_normal(shape, jnp.float32).astype(jnp.float32)
    # Fallback: CLT (Irwin-Hall, 12 uniforms) from raw PRNG bits — only
    # bit-ops / adds, which always lower in Mosaic.
    acc = jnp.zeros(shape, jnp.float32)
    for _ in range(12):
        bits = pltpu.bitcast(pltpu.prng_random_bits(shape), jnp.uint32)
        u = (bits & jnp.uint32(0xFFFF)).astype(jnp.float32) * (1.0 / 65536.0)
        acc = acc + u
    return acc - 6.0


def _pd_kernel_prng(seed_ref, x_ref, o_ref, *, responsivity, dark_current,
                    c_thermal, c_shot):
    """TPU fast path: noise generated in-kernel with the hardware PRNG.

    seed_ref : (1,) int32 scalar-prefetch seed (SMEM)
    x_ref    : (BR, 128) input tile
    o_ref    : (BR, 128) output tile
    """
    # Distinct, order-independent PRNG stream per grid block (megacore-safe:
    # the stream depends only on (seed, block index), not execution order).
    pltpu.prng_seed(seed_ref[0] + pl.program_id(0))
    x = x_ref[...].astype(jnp.float32)
    n_th = _std_normal(x.shape)
    n_sh = _std_normal(x.shape)
    y = _apply_pd(x, n_th, n_sh, responsivity, dark_current, c_thermal, c_shot)
    o_ref[...] = y.astype(o_ref.dtype)


def _pd_kernel_streamed(x_ref, nth_ref, nsh_ref, o_ref, *, responsivity,
                        dark_current, c_thermal, c_shot):
    """Portable path: Gaussian noise is streamed in as extra operands."""
    x = x_ref[...].astype(jnp.float32)
    y = _apply_pd(x, nth_ref[...].astype(jnp.float32),
                  nsh_ref[...].astype(jnp.float32),
                  responsivity, dark_current, c_thermal, c_shot)
    o_ref[...] = y.astype(o_ref.dtype)


def pd_forward(x, seed=0, *, pd_rin_DBCHZ=0, pd_GHZ=5, pd_T=300,
               pd_responsivity=1.0, pd_dark_current_pA=0, pd_resistance=50):
    """Pallas implementation of PD.forward for an arbitrary-shaped tensor."""
    del pd_rin_DBCHZ  # stored but unused in the PyTorch forward as well
    pd_HZ = pd_GHZ * 1.0e9
    c_thermal = 4.0 * BOLTZMANN_CONST * pd_T * pd_HZ / pd_resistance
    c_shot = 2.0 * ELEMENTARY_CHARGE * pd_HZ

    orig_shape = x.shape
    orig_dtype = x.dtype
    total = x.size

    # Flatten to a lane-dense (rows, 128) layout, padded so the grid tiles evenly.
    rows = -(-total // _LANES)
    block_rows = min(_MAX_BLOCK_ROWS, ((rows + 7) // 8) * 8)
    rows_pad = -(-rows // block_rows) * block_rows
    total_pad = rows_pad * _LANES

    x_flat = jnp.ravel(x)
    if total_pad != total:
        x_flat = jnp.pad(x_flat, (0, total_pad - total))
    x2d = x_flat.reshape(rows_pad, _LANES)

    static = dict(responsivity=pd_responsivity, dark_current=pd_dark_current_pA,
                  c_thermal=c_thermal, c_shot=c_shot)
    grid = (rows_pad // block_rows,)
    blk = (block_rows, _LANES)

    if jax.default_backend() == "tpu":
        # In-kernel hardware PRNG: 1 read + 1 write per element (bandwidth floor).
        seed_arr = jnp.asarray([seed], dtype=jnp.int32)
        out2d = pl.pallas_call(
            functools.partial(_pd_kernel_prng, **static),
            out_shape=jax.ShapeDtypeStruct((rows_pad, _LANES), orig_dtype),
            grid_spec=pltpu.PrefetchScalarGridSpec(
                num_scalar_prefetch=1,
                grid=grid,
                in_specs=[pl.BlockSpec(blk, lambda i, seed: (i, 0))],
                out_specs=pl.BlockSpec(blk, lambda i, seed: (i, 0)),
            ),
            compiler_params=pltpu.CompilerParams(
                dimension_semantics=("parallel",),   # elementwise -> megacore-shardable
                vmem_limit_bytes=32 * 1024 * 1024,   # explicit budget, safe on v7x too
            ),
        )(seed_arr, x2d)
    else:
        # Portable fallback (e.g. CPU): TPU PRNG primitives have no CPU lowering,
        # so generate the noise with jax.random and stream it into the kernel.
        kth, ksh = jax.random.split(jax.random.PRNGKey(seed))
        n_th = jax.random.normal(kth, (rows_pad, _LANES), jnp.float32)
        n_sh = jax.random.normal(ksh, (rows_pad, _LANES), jnp.float32)
        out2d = pl.pallas_call(
            functools.partial(_pd_kernel_streamed, **static),
            out_shape=jax.ShapeDtypeStruct((rows_pad, _LANES), orig_dtype),
            grid=grid,
            in_specs=[pl.BlockSpec(blk, lambda i: (i, 0)),
                      pl.BlockSpec(blk, lambda i: (i, 0)),
                      pl.BlockSpec(blk, lambda i: (i, 0))],
            out_specs=pl.BlockSpec(blk, lambda i: (i, 0)),
        )(x2d, n_th, n_sh)

    return out2d.reshape(-1)[:total].reshape(orig_shape)


if __name__ == "__main__":
    key = jax.random.PRNGKey(0)
    x = jax.random.normal(key, (2, 4, 16, 16), dtype=jnp.float32)

    out = pd_forward(x, seed=42)
    out = jax.block_until_ready(out)

    assert out.shape == x.shape
    assert bool(jnp.all(jnp.isfinite(out)))

    # With default PD parameters the injected noise is ~1.7e-12 additive and
    # ~1.6e-9 multiplicative, so the output must match the deterministic part
    # (x * responsivity + dark_current) to tight tolerance.
    det = x * 1.0 + 0.0
    assert jnp.allclose(out, det, atol=1e-5, rtol=1e-5)

    # Sanity-check the noise path with an exaggerated thermal scale.
    pd_T_big = 3.0e20
    c_thermal_big = 4.0 * BOLTZMANN_CONST * pd_T_big * 5.0e9 / 50.0
    out_noisy = jax.block_until_ready(pd_forward(x, seed=7, pd_T=pd_T_big))
    noise = (out_noisy - x) / c_thermal_big
    std = float(jnp.std(noise))
    mean = float(jnp.mean(noise))
    assert 0.5 < std < 2.0, std
    assert abs(mean) < 0.25, mean

    print("KERNEL_OK")
</pallas_src>

<mosaic_0001>
module attributes {stable_mosaic.version = 11 : i64} {
  func.func @_pd_kernel_streamed(%arg0: i32, %arg1: memref<16x128xf32, #tpu.memory_space<vmem>>, %arg2: memref<16x128xf32, #tpu.memory_space<vmem>>, %arg3: memref<16x128xf32, #tpu.memory_space<vmem>>, %arg4: memref<16x128xf32, #tpu.memory_space<vmem>>) attributes {dimension_semantics = [#tpu.dimension_semantics<arbitrary>], iteration_bounds = array<i64: 1>, scalar_prefetch = 0 : i64, scratch_operands = 0 : i64, tpu.core_type = #tpu.core_type<tc>, window_params = [{transform_indices = @transform_0, window_bounds = array<i64: 16, 128>}, {transform_indices = @transform_1, window_bounds = array<i64: 16, 128>}, {transform_indices = @transform_2, window_bounds = array<i64: 16, 128>}, {transform_indices = @transform_3, window_bounds = array<i64: 16, 128>}]} {
    %c0 = arith.constant 0 : index
    %c0_0 = arith.constant 0 : index
    %0 = vector.load %arg1[%c0, %c0_0] : memref<16x128xf32, #tpu.memory_space<vmem>>, vector<16x128xf32>
    %c0_1 = arith.constant 0 : index
    %c0_2 = arith.constant 0 : index
    %1 = vector.load %arg2[%c0_1, %c0_2] : memref<16x128xf32, #tpu.memory_space<vmem>>, vector<16x128xf32>
    %c0_3 = arith.constant 0 : index
    %c0_4 = arith.constant 0 : index
    %2 = vector.load %arg3[%c0_3, %c0_4] : memref<16x128xf32, #tpu.memory_space<vmem>>, vector<16x128xf32>
    %cst = arith.constant 1.000000e+00 : f32
    %3 = vector.broadcast %cst : f32 to vector<16x128xf32>
    %4 = arith.mulf %0, %3 : vector<16x128xf32>
    %cst_5 = arith.constant 0.000000e+00 : f32
    %5 = vector.broadcast %cst_5 : f32 to vector<16x128xf32>
    %6 = arith.addf %4, %5 : vector<16x128xf32>
    %cst_6 = arith.constant 1.65677877E-12 : f32
    %7 = vector.broadcast %cst_6 : f32 to vector<16x128xf32>
    %8 = arith.mulf %1, %7 : vector<16x128xf32>
    %9 = arith.addf %6, %8 : vector<16x128xf32>
    %cst_7 = arith.constant 1.60217661E-9 : f32
    %10 = vector.broadcast %cst_7 : f32 to vector<16x128xf32>
    %11 = arith.mulf %2, %10 : vector<16x128xf32>
    %cst_8 = arith.constant 1.000000e+00 : f32
    %12 = vector.broadcast %cst_8 : f32 to vector<16x128xf32>
    %13 = arith.addf %12, %11 : vector<16x128xf32>
    %14 = arith.mulf %9, %13 : vector<16x128xf32>
    %c0_9 = arith.constant 0 : index
    %c0_10 = arith.constant 0 : index
    %15 = vector.load %arg4[%c0_9, %c0_10] : memref<16x128xf32, #tpu.memory_space<vmem>>, vector<16x128xf32>
    tpu.vector_store %arg4[%c0_9, %c0_10], %14 {strides = array<i32>} : memref<16x128xf32, #tpu.memory_space<vmem>>, vector<16x128xf32>,
    return
  }
  func.func @transform_0(%arg0: i32) -> (i32, i32) {
    %c0_i32 = arith.constant 0 : i32
    %c0_i32_0 = arith.constant 0 : i32
    return %arg0, %c0_i32 : i32, i32
  }
  func.func @transform_1(%arg0: i32) -> (i32, i32) {
    %c0_i32 = arith.constant 0 : i32
    %c0_i32_0 = arith.constant 0 : i32
    return %arg0, %c0_i32 : i32, i32
  }
  func.func @transform_2(%arg0: i32) -> (i32, i32) {
    %c0_i32 = arith.constant 0 : i32
    %c0_i32_0 = arith.constant 0 : i32
    return %arg0, %c0_i32 : i32, i32
  }
  func.func @transform_3(%arg0: i32) -> (i32, i32) {
    %c0_i32 = arith.constant 0 : i32
    %c0_i32_0 = arith.constant 0 : i32
    return %arg0, %c0_i32 : i32, i32
  }
}

</mosaic_0001>

<bundles_post_ra>
// kernel: tpu_custom_call.1
= control target key start
LH: loop header
LB: loop body
LE: loop exit
PB: predicated region body
PF: predicated region fallthrough
CT: control target
= control target key end

     0   :  { %8 = vsyncpa [#allocation3], 0  ;;  %s236_s0 = inlined_call_operand.hbm [shape: f32[16,128], index: 0, kind: input, shape index: {}]   ;;  %s237_s1 = inlined_call_operand.hbm [shape: f32[16,128], index: 1, kind: input, shape index: {}]   ;;  %s238_s2 = inlined_call_operand.hbm [shape: f32[16,128], index: 2, kind: input, shape index: {}]   ;;  %s239_s3 = inlined_call_operand.hbm [shape: f32[16,128], index: 3, kind: output, shape index: {}]  }
   0x1   :  { %9 = vsyncpa [#allocation6], 0 }
   0x2   :  { %10 = vsyncpa [#allocation4], 0  ;;  %s186_s12 = smov [#allocation5]   ;;  %s187_s14 = smov [#allocation2]  }
   0x3   :  { %s28_s13 = sshll.u32 %s186_s12, 4  ;;  %s16_s15 = sshll.u32 %s187_s14, 4  ;;  %s29_s13 = int_to_ptr.vmem [resolvable:$true] %s28_s13  ;;  %s17_s15 = int_to_ptr.vmem [resolvable:$true] %s16_s15 }
   0x4   :  { %s108_s16 = scalar_lea.vmem %s29_s13, 256  ;;  %p113_p1 = scmp.lt.s32.totalorder %s29_s13, %s29_s13 }
   0x5   :  { %p109_p0 = scmp.ne.s32.totalorder %s29_s13, %s108_s16  ;;  %p114_p2 = scmp.lt.s32.totalorder %s108_s16, %s108_s16 }
   0x7   :  { %p115_p3 = por %p114_p2, %p113_p1 }
   0x9   :  { %p116_p4 = pnand %p115_p3, %p109_p0 }
   0xb   :  { %119 = shalt.err (!%p116_p4)
}
   0xc   :  { %s188_s17 = smov 128   ;;  %s189_s18 = smov 8  }
   0xd   :  { %34 = dma.hbm_to_vmem [thread:$0]  %s237_s1, 256, %s29_s13, [#allocation6], %s188_s17, %s188_s17, %s189_s18  }
   0xe   :  { %s128_s21 = scalar_lea.vmem %s17_s15, 256  ;;  %p133_p6 = scmp.lt.s32.totalorder %s17_s15, %s17_s15 }
   0xf   :  { %p129_p5 = scmp.ne.s32.totalorder %s17_s15, %s128_s21  ;;  %p134_p7 = scmp.lt.s32.totalorder %s128_s21, %s128_s21 }
  0x11   :  { %p135_p8 = por %p134_p7, %p133_p6 }
  0x13   :  { %p136_p9 = pnand %p135_p8, %p129_p5 }
  0x15   :  { %139 = shalt.err (!%p136_p9)
}
  0x16   :  { %22 = dma.hbm_to_vmem [thread:$0]  %s236_s0, 256, %s17_s15, [#allocation3], %s188_s17, %s188_s17, %s189_s18  }
  0x17   :  { %s190_s24 = smov [#allocation7]  }
  0x18   :  { %s40_s25 = sshll.u32 %s190_s24, 4  ;;  %s41_s25 = int_to_ptr.vmem [resolvable:$true] %s40_s25 }
  0x19   :  { %s148_s26 = scalar_lea.vmem %s41_s25, 256  ;;  %p153_p11 = scmp.lt.s32.totalorder %s41_s25, %s41_s25 }
  0x1a   :  { %p149_p10 = scmp.ne.s32.totalorder %s41_s25, %s148_s26  ;;  %p154_p12 = scmp.lt.s32.totalorder %s148_s26, %s148_s26 }
  0x1c   :  { %p155_p13 = por %p154_p12, %p153_p11 }
  0x1e   :  { %p156_p0 = pnand %p155_p13, %p149_p10 }
  0x20   :  { %159 = shalt.err (!%p156_p0)
}
  0x21   :  { %46 = dma.hbm_to_vmem [thread:$0]  %s238_s2, 256, %s41_s25, [#allocation6], %s188_s17, %s188_s17, %s189_s18  }
  0x22   :  { %180 = dma.done.wait [#allocation3], 256  }
  0x23   :  { %181 = vsyncadd [#allocation3], 4294967040 }
  0x24   :  { %182 = dma.done.wait [#allocation6], 512  }
  0x25   :  { %183 = vsyncadd [#allocation6], 4294966784  ;;  %v56_v0 = vld [vmem:[#allocation2] sm:$0xff]  ;;  %v58_v1 = vld [vmem:[#allocation5] sm:$0xff]  ;;  %s191_s0 = smov [#allocation8]  }
  0x26   :  { %v60_v2 = vld [vmem:[#allocation7] sm:$0xff]  ;;  %v64_v3 = vmul.f32 1.6567788e-12, %v58_v1  ;;  %v57_v5 = vld [vmem:[#allocation2 + $0x8] sm:$0xff]  ;;  %v59_v6 = vld [vmem:[#allocation5 + $0x8] sm:$0xff]  ;;  %s81_s28 = sshll.u32 %s191_s0, 4  ;;  %s82_s28 = int_to_ptr.vmem [resolvable:$true] %s81_s28 }
  0x27   :  { %v68_v4 = vmul.f32 1.6021766e-09, %v60_v2  ;;  %v61_v7 = vld [vmem:[#allocation7 + $0x8] sm:$0xff]  ;;  %v65_v8 = vmul.f32 1.6567788e-12, %v59_v6  ;;  %s160_s2 = scalar_lea.vmem %s82_s28, 256  ;;  %p165_p2 = scmp.lt.s32.totalorder %s82_s28, %s82_s28 }
  0x28   :  { %v66_v9 = vadd.f32 %v64_v3, %v56_v0  ;;  %v69_v11 = vmul.f32 1.6021766e-09, %v61_v7  ;;  %p161_p1 = scmp.ne.s32.totalorder %s82_s28, %s160_s2  ;;  %p166_p3 = scmp.lt.s32.totalorder %s160_s2, %s160_s2 }
  0x29   :  { %v70_v10 = vadd.f32 1.0, %v68_v4  ;;  %v67_v12 = vadd.f32 %v65_v8, %v57_v5 }
  0x2a   :  { %v71_v14 = vadd.f32 1.0, %v69_v11  ;;  %p167_p4 = por %p166_p3, %p165_p2 }
  0x2b   :  { %v72_v13 = vmul.f32 %v70_v10, %v66_v9 }
  0x2c   :  { %v73_v15 = vmul.f32 %v71_v14, %v67_v12  ;;  %p168_p5 = pnand %p167_p4, %p161_p1 }
  0x2d   :  { %74 = vst [vmem:[#allocation8] sm:$0xff] %v72_v13 }
  0x2e   :  { %75 = vst [vmem:[#allocation8 + $0x8] sm:$0xff] %v73_v15 }
  0x2f   :  { %171 = shalt.err (!%p168_p5)
}
  0x30   :  { %87 = dma.vmem_to_hbm [thread:$0]  %s82_s28, 256, %s239_s3, [#allocation4], %s188_s17, %s188_s17, %s189_s18  }
  0x31   :  { %184 = dma.done.wait [#allocation4], 256  }
  0x32   :  { %185 = vsyncadd [#allocation4], 4294967040 }
  0x33   :  { %91 = vsyncpa [#allocation3], 1 }
  0x34   :  { %92 = vsyncpa [#allocation6], 1 }
  0x35   :  { %93 = vsyncpa [#allocation4], 1 }

</bundles_post_ra>
